<compile_context>
chip_gen: v7x
topology: tpu7x:2x2x1
jax: 0.10.0
libtpu: 0.0.40
codegen_flags: <defaults>
</compile_context>

<pallas_src>
import functools

import jax
import jax.numpy as jnp
from jax.experimental import pallas as pl
from jax.experimental.pallas import tpu as pltpu


def _round_up(x, m):
    return (x + m - 1) // m * m


def _masked_outlier_loss_kernel(
    logit_ref, target_ref, sq_ref, mask_ref,        # inputs (one tile each)
    out_ref,                                        # (1, 2, 8, 128) partials
    acc_loss_ref, acc_mask_ref,                     # tile-shaped VMEM scratch
    *,
    steps_per_part, n_blocks, block,
    tiled_axis, tiled_extent, tiled_block,
    needs_gate, needs_edge_mask,
):
    p = pl.program_id(0)                            # partition (parallel)
    s = pl.program_id(1)                            # step within partition
    b = p * steps_per_part + s                      # global block index

    @pl.when(s == 0)
    def _init():
        acc_loss_ref[...] = jnp.zeros_like(acc_loss_ref)
        acc_mask_ref[...] = jnp.zeros_like(acc_mask_ref)

    def _accumulate():
        logit = logit_ref[...].astype(jnp.float32)
        target = target_ref[...].astype(jnp.float32)
        mask = mask_ref[...].astype(jnp.float32)
        sq = sq_ref[...]

        if needs_edge_mask:
            # Ragged last block: elements past the true extent hold unspecified
            # data -> force to harmless values so no NaN/Inf reaches the sums.
            iota = jax.lax.broadcasted_iota(jnp.int32, block, tiled_axis)
            valid = (b * tiled_block + iota) < tiled_extent
            logit = jnp.where(valid, logit, 0.5)
            target = jnp.where(valid, target, 0.0)
            mask = jnp.where(valid, mask, 0.0)
            sq = jnp.where(valid, sq, 0.0)

        # PyTorch F.binary_cross_entropy clamps each log term at -100.
        log_p = jnp.maximum(jnp.log(logit), -100.0)
        log_1mp = jnp.maximum(jnp.log(1.0 - logit), -100.0)
        bce = -(target * log_p + (1.0 - target) * log_1mp)
        norm = jnp.sqrt(sq)                         # ||true_offsets||_2 over dim=2

        # Elementwise VPU accumulation; the reduce is deferred to the last step.
        acc_loss_ref[...] += bce * norm * mask
        acc_mask_ref[...] += mask

    if needs_gate:
        pl.when(b < n_blocks)(_accumulate)          # skip dead tail steps
    else:
        _accumulate()

    @pl.when(s == steps_per_part - 1)
    def _finalize():
        loss_sum = jnp.sum(acc_loss_ref[...])
        mask_sum = jnp.sum(acc_mask_ref[...])
        out_ref[0, 0] = jnp.full((8, 128), loss_sum, jnp.float32)
        out_ref[0, 1] = jnp.full((8, 128), mask_sum, jnp.float32)


@functools.partial(jax.jit, static_argnames=("tile_elements",))
def masked_outlier_loss(logit, target, true_offsets, mask, *,
                        tile_elements=256 * 1024):
    """logit, target, mask: (B, N); true_offsets: (B, N, D). Returns scalar."""
    B, N = logit.shape

    # Fused sum-of-squares over the offset dim: one XLA pass over true_offsets,
    # no host transpose, no materialized f32 copy of the (B, N, D) tensor.
    sq = jnp.sum(jnp.square(true_offsets.astype(jnp.float32)), axis=-1)  # (B,N) f32

    T = B * N
    lane = next((c for c in (512, 256, 128) if T % c == 0), None)

    if lane is not None:
        # Lane-dense flattening: free, layout-preserving reshape to (R, C).
        C = lane
        R = T // C
        TR = max(8, (tile_elements // C) // 8 * 8)
        if TR >= R:
            TR = R                                  # full rows (always legal)
        operands = [a.reshape(R, C) for a in (logit, target, sq, mask)]
        block = (TR, C)
        n_blk = pl.cdiv(R, TR)
        tiled_axis, tiled_extent, tiled_block = 0, R, TR
    else:
        # TODO(synk): B*N not a multiple of 128 -> keep the (B, N) layout; this
        # wastes sublanes when B is small but still avoids any host pad/copy.
        padded_rows = _round_up(B, 8)
        TC = max(128, (tile_elements // padded_rows) // 128 * 128)
        if TC >= N:
            TC = N                                  # full columns (always legal)
        operands = [logit, target, sq, mask]
        block = (B, TC)
        n_blk = pl.cdiv(N, TC)
        tiled_axis, tiled_extent, tiled_block = 1, N, TC

    P = 2 if n_blk >= 2 else 1                      # keep both v7x TCs busy
    S = pl.cdiv(n_blk, P)

    def in_idx(p, s):
        b = jnp.minimum(p * S + s, n_blk - 1)       # clamp dead tail steps
        return (b, 0) if tiled_axis == 0 else (0, b)

    kernel = functools.partial(
        _masked_outlier_loss_kernel,
        steps_per_part=S,
        n_blocks=n_blk,
        block=block,
        tiled_axis=tiled_axis,
        tiled_extent=tiled_extent,
        tiled_block=tiled_block,
        needs_gate=(P * S != n_blk),
        needs_edge_mask=(tiled_extent % tiled_block != 0),
    )

    out = pl.pallas_call(
        kernel,
        out_shape=jax.ShapeDtypeStruct((P, 2, 8, 128), jnp.float32),
        grid_spec=pltpu.PrefetchScalarGridSpec(
            num_scalar_prefetch=0,
            grid=(P, S),
            in_specs=[pl.BlockSpec(block, in_idx) for _ in range(4)],
            out_specs=pl.BlockSpec((1, 2, 8, 128), lambda p, s: (p, 0, 0, 0)),
            scratch_shapes=[pltpu.VMEM(block, jnp.float32),
                            pltpu.VMEM(block, jnp.float32)],
        ),
        compiler_params=pltpu.CompilerParams(
            dimension_semantics=("parallel", "arbitrary"),
            vmem_limit_bytes=32 * 1024 * 1024,
        ),
    )(*operands)

    partials = out[:, :, 0, 0]                      # (P, 2) per-partition sums
    return partials[:, 0].sum() / partials[:, 1].sum()


def _reference(logit, target, true_offsets, mask):
    log_p = jnp.maximum(jnp.log(logit), -100.0)
    log_1mp = jnp.maximum(jnp.log(1.0 - logit), -100.0)
    bce = -(target * log_p + (1.0 - target) * log_1mp)
    loss = bce * jnp.linalg.norm(true_offsets, axis=2) * mask
    return loss.sum() / mask.sum()


if __name__ == "__main__":
    key = jax.random.PRNGKey(0)

    # Small configs; the tiny tile_elements in the later ones force the
    # multi-block / ragged / gated / two-partition code paths.
    configs = [
        (2, 256, 3, 256 * 1024),   # flattened layout, single block
        (10, 1024, 3, 4096),       # flattened layout, multi-block + ragged rows
        (2, 520, 4, 2048),         # (B, N) fallback layout, ragged columns
    ]

    for i, (B, N, D, tile_elements) in enumerate(configs):
        k1, k2, k3, k4, key = jax.random.split(key, 5)
        logit = jax.nn.sigmoid(jax.random.normal(k1, (B, N), jnp.float32))
        target = jax.random.bernoulli(k2, 0.5, (B, N)).astype(jnp.float32)
        true_offsets = jax.random.normal(k3, (B, N, D), jnp.float32)
        mask = jax.random.bernoulli(k4, 0.7, (B, N)).astype(jnp.float32)

        out = masked_outlier_loss(logit, target, true_offsets, mask,
                                  tile_elements=tile_elements)
        out = jax.block_until_ready(out)
        ref = _reference(logit, target, true_offsets, mask)
        assert jnp.allclose(out, ref, rtol=1e-5, atol=1e-5), (i, out, ref)

    print("KERNEL_OK")
</pallas_src>

<mosaic_0001>
module attributes {stable_mosaic.version = 11 : i64} {
  func.func @_masked_outlier_loss_kernel(%arg0: i32, %arg1: i32, %arg2: memref<1x512xf32, #tpu.memory_space<vmem>>, %arg3: memref<1x512xf32, #tpu.memory_space<vmem>>, %arg4: memref<1x512xf32, #tpu.memory_space<vmem>>, %arg5: memref<1x512xf32, #tpu.memory_space<vmem>>, %arg6: memref<1x2x8x128xf32, #tpu.memory_space<vmem>>, %arg7: memref<1x512xf32, #tpu.memory_space<vmem>>, %arg8: memref<1x512xf32, #tpu.memory_space<vmem>>) attributes {dimension_semantics = [#tpu.dimension_semantics<parallel>, #tpu.dimension_semantics<arbitrary>], iteration_bounds = array<i64: 1, 1>, scalar_prefetch = 0 : i64, scratch_operands = 2 : i64, tpu.core_type = #tpu.core_type<tc>, window_params = [{transform_indices = @transform_0, window_bounds = array<i64: 1, 512>}, {transform_indices = @transform_1, window_bounds = array<i64: 1, 512>}, {transform_indices = @transform_2, window_bounds = array<i64: 1, 512>}, {transform_indices = @transform_3, window_bounds = array<i64: 1, 512>}, {transform_indices = @transform_4, window_bounds = array<i64: 1, 2, 8, 128>}]} {
    %c0_i32 = arith.constant 0 : i32
    %0 = arith.cmpi eq, %arg1, %c0_i32 : i32
    %1 = arith.extui %0 : i1 to i32
    %c0_i32_0 = arith.constant 0 : i32
    %2 = arith.cmpi ne, %1, %c0_i32_0 : i32
    scf.if %2 {
      %cst_22 = arith.constant 0.000000e+00 : f32
      %34 = vector.broadcast %cst_22 : f32 to vector<1x512xf32>
      %c0_23 = arith.constant 0 : index
      %c0_24 = arith.constant 0 : index
      %35 = vector.load %arg7[%c0_23, %c0_24] : memref<1x512xf32, #tpu.memory_space<vmem>>, vector<1x512xf32>
      tpu.vector_store %arg7[%c0_23, %c0_24], %34 {strides = array<i32>} : memref<1x512xf32, #tpu.memory_space<vmem>>, vector<1x512xf32>,
      %cst_25 = arith.constant 0.000000e+00 : f32
      %36 = vector.broadcast %cst_25 : f32 to vector<1x512xf32>
      %c0_26 = arith.constant 0 : index
      %c0_27 = arith.constant 0 : index
      %37 = vector.load %arg8[%c0_26, %c0_27] : memref<1x512xf32, #tpu.memory_space<vmem>>, vector<1x512xf32>
      tpu.vector_store %arg8[%c0_26, %c0_27], %36 {strides = array<i32>} : memref<1x512xf32, #tpu.memory_space<vmem>>, vector<1x512xf32>,
    } else {
    }
    %c0 = arith.constant 0 : index
    %c0_1 = arith.constant 0 : index
    %3 = vector.load %arg2[%c0, %c0_1] : memref<1x512xf32, #tpu.memory_space<vmem>>, vector<1x512xf32>
    %c0_2 = arith.constant 0 : index
    %c0_3 = arith.constant 0 : index
    %4 = vector.load %arg3[%c0_2, %c0_3] : memref<1x512xf32, #tpu.memory_space<vmem>>, vector<1x512xf32>
    %c0_4 = arith.constant 0 : index
    %c0_5 = arith.constant 0 : index
    %5 = vector.load %arg5[%c0_4, %c0_5] : memref<1x512xf32, #tpu.memory_space<vmem>>, vector<1x512xf32>
    %c0_6 = arith.constant 0 : index
    %c0_7 = arith.constant 0 : index
    %6 = vector.load %arg4[%c0_6, %c0_7] : memref<1x512xf32, #tpu.memory_space<vmem>>, vector<1x512xf32>
    %7 = math.log %3 : vector<1x512xf32>
    %cst = arith.constant -1.000000e+02 : f32
    %8 = vector.broadcast %cst : f32 to vector<1x512xf32>
    %9 = arith.maximumf %7, %8 : vector<1x512xf32>
    %cst_8 = arith.constant 1.000000e+00 : f32
    %10 = vector.broadcast %cst_8 : f32 to vector<1x512xf32>
    %11 = arith.subf %10, %3 : vector<1x512xf32>
    %12 = math.log %11 : vector<1x512xf32>
    %cst_9 = arith.constant -1.000000e+02 : f32
    %13 = vector.broadcast %cst_9 : f32 to vector<1x512xf32>
    %14 = arith.maximumf %12, %13 : vector<1x512xf32>
    %15 = arith.mulf %4, %9 : vector<1x512xf32>
    %cst_10 = arith.constant 1.000000e+00 : f32
    %16 = vector.broadcast %cst_10 : f32 to vector<1x512xf32>
    %17 = arith.subf %16, %4 : vector<1x512xf32>
    %18 = arith.mulf %17, %14 : vector<1x512xf32>
    %19 = arith.addf %15, %18 : vector<1x512xf32>
    %cst_11 = arith.constant 0.000000e+00 : f32
    %20 = vector.broadcast %cst_11 : f32 to vector<1x512xf32>
    %21 = arith.subf %20, %19 : vector<1x512xf32>
    %22 = math.sqrt %6 : vector<1x512xf32>
    %c0_12 = arith.constant 0 : index
    %c0_13 = arith.constant 0 : index
    %23 = vector.load %arg7[%c0_12, %c0_13] : memref<1x512xf32, #tpu.memory_space<vmem>>, vector<1x512xf32>
    %24 = arith.mulf %21, %22 : vector<1x512xf32>
    %25 = arith.mulf %24, %5 : vector<1x512xf32>
    %26 = arith.addf %23, %25 : vector<1x512xf32>
    %c0_14 = arith.constant 0 : index
    %c0_15 = arith.constant 0 : index
    %27 = vector.load %arg7[%c0_14, %c0_15] : memref<1x512xf32, #tpu.memory_space<vmem>>, vector<1x512xf32>
    tpu.vector_store %arg7[%c0_14, %c0_15], %26 {strides = array<i32>} : memref<1x512xf32, #tpu.memory_space<vmem>>, vector<1x512xf32>,
    %c0_16 = arith.constant 0 : index
    %c0_17 = arith.constant 0 : index
    %28 = vector.load %arg8[%c0_16, %c0_17] : memref<1x512xf32, #tpu.memory_space<vmem>>, vector<1x512xf32>
    %29 = arith.addf %28, %5 : vector<1x512xf32>
    %c0_18 = arith.constant 0 : index
    %c0_19 = arith.constant 0 : index
    %30 = vector.load %arg8[%c0_18, %c0_19] : memref<1x512xf32, #tpu.memory_space<vmem>>, vector<1x512xf32>
    tpu.vector_store %arg8[%c0_18, %c0_19], %29 {strides = array<i32>} : memref<1x512xf32, #tpu.memory_space<vmem>>, vector<1x512xf32>,
    %c0_i32_20 = arith.constant 0 : i32
    %31 = arith.cmpi eq, %arg1, %c0_i32_20 : i32
    %32 = arith.extui %31 : i1 to i32
    %c0_i32_21 = arith.constant 0 : i32
    %33 = arith.cmpi ne, %32, %c0_i32_21 : i32
    scf.if %33 {
      %c0_22 = arith.constant 0 : index
      %c0_23 = arith.constant 0 : index
      %34 = vector.load %arg7[%c0_22, %c0_23] : memref<1x512xf32, #tpu.memory_space<vmem>>, vector<1x512xf32>
      %35 = vector.shape_cast %34 : vector<1x512xf32> to vector<1x1x512xf32>
      %cst_24 = arith.constant dense<0.000000e+00> : vector<1xf32>
      %36 = vector.multi_reduction <add>, %35, %cst_24 [1, 2] : vector<1x1x512xf32> to vector<1xf32>
      %37 = vector.shape_cast %36 : vector<1xf32> to vector<1x1x1xf32>
      %38 = vector.extract %37[0, 0, 0] : f32 from vector<1x1x1xf32>
      %c0_25 = arith.constant 0 : index
      %c0_26 = arith.constant 0 : index
      %39 = vector.load %arg8[%c0_25, %c0_26] : memref<1x512xf32, #tpu.memory_space<vmem>>, vector<1x512xf32>
      %40 = vector.shape_cast %39 : vector<1x512xf32> to vector<1x1x512xf32>
      %cst_27 = arith.constant dense<0.000000e+00> : vector<1xf32>
      %41 = vector.multi_reduction <add>, %40, %cst_27 [1, 2] : vector<1x1x512xf32> to vector<1xf32>
      %42 = vector.shape_cast %41 : vector<1xf32> to vector<1x1x1xf32>
      %43 = vector.extract %42[0, 0, 0] : f32 from vector<1x1x1xf32>
      %44 = vector.broadcast %38 : f32 to vector<8x128xf32>
      %c0_28 = arith.constant 0 : index
      %c0_29 = arith.constant 0 : index
      %c0_30 = arith.constant 0 : index
      %c0_31 = arith.constant 0 : index
      %45 = vector.load %arg6[%c0_28, %c0_29, %c0_30, %c0_31] : memref<1x2x8x128xf32, #tpu.memory_space<vmem>>, vector<1x1x8x128xf32>
      %46 = vector.shape_cast %45 : vector<1x1x8x128xf32> to vector<8x128xf32>
      %47 = vector.shape_cast %44 : vector<8x128xf32> to vector<1x1x8x128xf32>
      tpu.vector_store %arg6[%c0_28, %c0_29, %c0_30, %c0_31], %47 {strides = array<i32>} : memref<1x2x8x128xf32, #tpu.memory_space<vmem>>, vector<1x1x8x128xf32>,
      %48 = vector.broadcast %43 : f32 to vector<8x128xf32>
      %c0_32 = arith.constant 0 : index
      %c1 = arith.constant 1 : index
      %c0_33 = arith.constant 0 : index
      %c0_34 = arith.constant 0 : index
      %49 = vector.load %arg6[%c0_32, %c1, %c0_33, %c0_34] : memref<1x2x8x128xf32, #tpu.memory_space<vmem>>, vector<1x1x8x128xf32>
      %50 = vector.shape_cast %49 : vector<1x1x8x128xf32> to vector<8x128xf32>
      %51 = vector.shape_cast %48 : vector<8x128xf32> to vector<1x1x8x128xf32>
      tpu.vector_store %arg6[%c0_32, %c1, %c0_33, %c0_34], %51 {strides = array<i32>} : memref<1x2x8x128xf32, #tpu.memory_space<vmem>>, vector<1x1x8x128xf32>,
    } else {
    }
    return
  }
  func.func @transform_0(%arg0: i32, %arg1: i32) -> (i32, i32) {
    %c1_i32 = arith.constant 1 : i32
    %0 = arith.muli %arg0, %c1_i32 : i32
    %1 = arith.addi %0, %arg1 : i32
    %c0_i32 = arith.constant 0 : i32
    %2 = arith.minsi %1, %c0_i32 : i32
    %c0_i32_0 = arith.constant 0 : i32
    %c0_i32_1 = arith.constant 0 : i32
    return %2, %c0_i32_0 : i32, i32
  }
  func.func @transform_1(%arg0: i32, %arg1: i32) -> (i32, i32) {
    %c1_i32 = arith.constant 1 : i32
    %0 = arith.muli %arg0, %c1_i32 : i32
    %1 = arith.addi %0, %arg1 : i32
    %c0_i32 = arith.constant 0 : i32
    %2 = arith.minsi %1, %c0_i32 : i32
    %c0_i32_0 = arith.constant 0 : i32
    %c0_i32_1 = arith.constant 0 : i32
    return %2, %c0_i32_0 : i32, i32
  }
  func.func @transform_2(%arg0: i32, %arg1: i32) -> (i32, i32) {
    %c1_i32 = arith.constant 1 : i32
    %0 = arith.muli %arg0, %c1_i32 : i32
    %1 = arith.addi %0, %arg1 : i32
    %c0_i32 = arith.constant 0 : i32
    %2 = arith.minsi %1, %c0_i32 : i32
    %c0_i32_0 = arith.constant 0 : i32
    %c0_i32_1 = arith.constant 0 : i32
    return %2, %c0_i32_0 : i32, i32
  }
  func.func @transform_3(%arg0: i32, %arg1: i32) -> (i32, i32) {
    %c1_i32 = arith.constant 1 : i32
    %0 = arith.muli %arg0, %c1_i32 : i32
    %1 = arith.addi %0, %arg1 : i32
    %c0_i32 = arith.constant 0 : i32
    %2 = arith.minsi %1, %c0_i32 : i32
    %c0_i32_0 = arith.constant 0 : i32
    %c0_i32_1 = arith.constant 0 : i32
    return %2, %c0_i32_0 : i32, i32
  }
  func.func @transform_4(%arg0: i32, %arg1: i32) -> (i32, i32, i32, i32) {
    %c0_i32 = arith.constant 0 : i32
    %c0_i32_0 = arith.constant 0 : i32
    %c0_i32_1 = arith.constant 0 : i32
    %c0_i32_2 = arith.constant 0 : i32
    return %arg0, %c0_i32, %c0_i32_0, %c0_i32_1 : i32, i32, i32, i32
  }
}

</mosaic_0001>

<bundles_post_ra>
// kernel: masked_outlier_loss.1
= control target key start
LH: loop header
LB: loop body
LE: loop exit
PB: predicated region body
PF: predicated region fallthrough
CT: control target
= control target key end

     0   :  { %v129_v0 = vlaneseq  ;;  %v295_v5 = vmov 0.0   ;;  %vm195_vm3 = vcmask 1040384   ;;  %s359_s0 = inlined_call_operand.vmem [shape: f32[1,512], index: 0, kind: input, shape index: {}]   ;;  %s360_s2 = inlined_call_operand.vmem [shape: f32[1,512], index: 2, kind: input, shape index: {}]   ;;  %s361_s3 = inlined_call_operand.vmem [shape: f32[1,512], index: 3, kind: input, shape index: {}]   ;;  %s362_s1 = inlined_call_operand.vmem [shape: f32[1,512], index: 1, kind: input, shape index: {}]   ;;  %s363_s4 = inlined_call_operand.vmem [shape: f32[1,2,8,128], index: 4, kind: output, shape index: {}]  }
   0x1   :  { %v135_v1 = vld [vmem:[%s359_s0] sm:$0xf] }
   0x2   :  { %vm324_vm0 = vcmp.lt.s32.totalorder %v129_v0, 512  ;;  %v138_v3 = vld [vmem:[%s360_s2] sm:$0xf]  ;;  %289 = vlog2.f32 %v135_v1  ;;  %v142_v4 = vsub.f32 1.0, %v135_v1  ;;  %v176_v29 = vshrl.u32 %v129_v0, 7 }
   0x3   :  { %133 = vst.msk [vmem:[#allocation2] sm:$0xf] %vm324_vm0, %v295_v5  ;;  %134 = vst.msk [vmem:[#allocation3] sm:$0xf] %vm324_vm0, %v295_v5  ;;  %291 = vrsqrt.f32 %v138_v3  ;;  %v137_v6 = vld [vmem:[%s361_s3] sm:$0xf] }
   0x4   :  { %293 = vlog2.f32 %v142_v4  ;;  %v136_v10 = vld [vmem:[%s362_s1] sm:$0xf]  ;;  %vm153_vm1 = vcmp.eq.f32.partialorder %v138_v3, inf  ;;  %v156_v20 = vand.u32 2147483648, %v138_v3  ;;  %vm155_vm2 = vcmp.eq.f32.partialorder %v138_v3, 0.0 }
   0x5   :  { %v147_v16 = vsub.f32 1.0, %v136_v10  ;;  %v177_v32 = vsub.s32 0, %v176_v29  ;;  %v181_v33 = vsub.s32 1, %v176_v29  ;;  %v185_v36 = vsub.s32 2, %v176_v29 }
   0x6   :  { %v189_v37 = vsub.s32 3, %v176_v29 }
   0xa   :  { %v167_v7 = vld [vmem:[#allocation3] sm:$0xf]  ;;  %v158_v27 = vld [vmem:[#allocation2] sm:$0xf] }
   0xb   :  { %v168_v8 = vadd.f32 %v167_v7, %v137_v6 }
   0xc   :  { %v290_v9 = vpop.eup %289 }
   0xd   :  { %v292_v11 = vpop.eup %291  ;;  %v140_v12 = vmul.f32 0.6931472, %v290_v9  ;;  %169 = vst.msk [vmem:[#allocation3] sm:$0xf] %vm324_vm0, %v168_v8 }
   0xe   :  { %v294_v13 = vpop.eup %293  ;;  %v152_v17 = vmul.f32 %v292_v11, %v138_v3 }
   0xf   :  { %v141_v14 = vmax.f32 %v140_v12, -100.0  ;;  %v144_v15 = vmul.f32 0.6931472, %v294_v13 }
  0x10   :  { %v154_v22 = vsel %vm153_vm1, %v138_v3, %v152_v17 }
  0x11   :  { %v145_v18 = vmax.f32 %v144_v15, -100.0  ;;  %v146_v19 = vmul.f32 %v141_v14, %v136_v10  ;;  %v157_v24 = vsel %vm155_vm2, %v156_v20, %v154_v22 }
  0x13   :  { %v148_v21 = vmul.f32 %v147_v16, %v145_v18 }
  0x14   :  { %v212_v31 = vld [vmem:[#allocation3] sm:$0xf] }
  0x15   :  { %v149_v23 = vadd.f32 %v148_v21, %v146_v19  ;;  %v217_v34 = vrot.slane %v212_v31, %v177_v32  ;;  %v221_v35 = vrot.slane %v212_v31, %v181_v33  ;;  %v225_v38 = vrot.slane %v212_v31, %v185_v36 }
  0x16   :  { %v229_v46 = vrot.slane %v212_v31, %v189_v37 }
  0x17   :  { %v150_v25 = vsub.f32 0.0, %v149_v23  ;;  %v234_v39 = vsel %vm195_vm3, %v217_v34, 0.0  ;;  %v235_v40 = vsel %vm195_vm3, %v221_v35, 0.0  ;;  %v237_v51 = vsel %vm195_vm3, %v225_v38, 0.0 }
  0x18   :  { %v236_v47 = vadd.f32 %v235_v40, %v234_v39  ;;  %v239_v56 = vsel %vm195_vm3, %v229_v46, 0.0 }
  0x19   :  { %v159_v26 = vmul.f32 %v157_v24, %v150_v25 }
  0x1a   :  { %v238_v55 = vadd.f32 %v237_v51, %v236_v47 }
  0x1b   :  { %v160_v28 = vmul.f32 %v159_v26, %v137_v6 }
  0x1c   :  { %v240_v58 = vadd.f32 %v239_v56, %v238_v55 }
  0x1d   :  { %v161_v30 = vadd.f32 %v160_v28, %v158_v27 }
  0x1f   :  { %166 = vst.msk [vmem:[#allocation2] sm:$0xf] %vm324_vm0, %v161_v30 }
  0x26   :  { %v173_v41 = vld [vmem:[#allocation2] sm:$0xf] }
  0x27   :  { %v178_v42 = vrot.slane %v173_v41, %v177_v32  ;;  %v182_v43 = vrot.slane %v173_v41, %v181_v33  ;;  %v186_v44 = vrot.slane %v173_v41, %v185_v36  ;;  %v190_v45 = vrot.slane %v173_v41, %v189_v37 }
  0x29   :  { %v196_v48 = vsel %vm195_vm3, %v178_v42, 0.0  ;;  %v197_v49 = vsel %vm195_vm3, %v182_v43, 0.0  ;;  %v199_v50 = vsel %vm195_vm3, %v186_v44, 0.0  ;;  %v201_v53 = vsel %vm195_vm3, %v190_v45, 0.0 }
  0x2a   :  { %v198_v52 = vadd.f32 %v197_v49, %v196_v48 }
  0x2c   :  { %v200_v54 = vadd.f32 %v199_v50, %v198_v52 }
  0x2e   :  { %v202_v57 = vadd.f32 %v201_v53, %v200_v54 }
  0x30   :  { %203 = vadd.xlane.f32.xlu0 %v202_v57 }
  0x34   :  { %241 = vadd.xlane.f32.xlu0 %v240_v58 }
  0xbd   :  { %v204_v59 = vpop.xlane.xlu0 %203 }
  0xbe   :  { %v205_v60 = vrot.slane %v204_v59, 4 }
  0xc0   :  { %v206_v61 = vadd.f32 %v205_v60, %v204_v59 }
  0xc1   :  { %v242_v62 = vpop.xlane.xlu0 %241 }
  0xc2   :  { %v207_v63 = vrot.slane %v206_v61, 2  ;;  %v243_v0 = vrot.slane %v242_v62, 4 }
  0xc4   :  { %v244_v1 = vadd.f32 %v243_v0, %v242_v62  ;;  %v208_v2 = vadd.f32 %v207_v63, %v206_v61 }
  0xc6   :  { %v245_v3 = vrot.slane %v244_v1, 2  ;;  %v209_v4 = vrot.slane %v208_v2, 1 }
  0xc8   :  { %v246_v5 = vadd.f32 %v245_v3, %v244_v1  ;;  %v210_v6 = vadd.f32 %v209_v4, %v208_v2 }
  0xca   :  { %284 = vpush %v210_v6  ;;  %v247_v7 = vrot.slane %v246_v5, 1 }
  0xcc   :  { %v248_v8 = vadd.f32 %v247_v7, %v246_v5 }
  0xce   :  { %286 = vpush %v248_v8 }
  0xfb   :  { %s285_s1 = spop %284 }
  0xfc   :  { %v250_v9 = vstv %s285_s1 }
  0xfd   :  { %251 = vst [vmem:[%s363_s4] sm:$0xff] %v250_v9 }
  0xff   :  { %s287_s22 = spop %286 }
 0x100   :  { %v252_v10 = vstv %s287_s22 }
 0x101   :  { %283 = vst [vmem:[%s363_s4 + $0x8] sm:$0xff] %v252_v10 }

</bundles_post_ra>
